<compile_context>
chip_gen: v7x
topology: tpu7x:2x2x1
jax: 0.10.0
libtpu: 0.0.40
codegen_flags: <defaults>
</compile_context>

<pallas_src>
import jax
import jax.numpy as jnp
from jax.experimental import pallas as pl
from jax.experimental.pallas import tpu as pltpu


# ----------------------------- Pallas kernel ------------------------------

def _conv1x1_bias_kernel(x_ref, w_ref, b_ref, o_ref):
    # x_ref: (Cin, ts)   pooled activations (bf16/f32), spatial on lanes
    # w_ref: (Cout, Cin) BN-folded conv weight (constant block -> DMA'd once)
    # b_ref: (Cout, 1)   BN-folded bias, f32
    # o_ref: (Cout, ts)  f32 output block, already in NC(S)=NCDHW order
    acc = jnp.dot(w_ref[...], x_ref[...], preferred_element_type=jnp.float32)
    o_ref[...] = acc + b_ref[...]


def _pick_spatial_tile(S, Cin, Cout, in_bytes, vmem_budget_bytes):
    """Largest spatial tile ts (dividing S exactly) that fits the VMEM budget.

    Per grid step VMEM ~= 2 double-buffered (Cin, ts) input blocks
                        + 2 double-buffered (Cout, ts) f32 output blocks
                        + one resident (Cout, Cin) weight (small).
    The budget is conservative so the same tiling fits v5e's 16 MiB default
    scoped VMEM and v7x's 64 MiB physical VMEM.  Prefers lane-dense multiples
    of 128 and keeps >= 4 grid steps along S when S is large so both v7x
    TensorCores get >= 2 pipelined steps each.
    """
    per_col = 2 * Cin * in_bytes + 2 * Cout * 4
    cap = max(128, vmem_budget_bytes // per_col)
    if S >= 4 * 128:
        cap = min(cap, max(128, S // 4))
    if S <= cap:
        return S
    t = (min(cap, S) // 128) * 128
    while t >= 128:
        if S % t == 0:
            return t
        t -= 128
    for t in range(int(min(cap, S)), 0, -1):  # exact-divisor fallback, no padding
        if S % t == 0:
            return t
    return S


def conv1x1_bias_ncs(pooled_ncs, w_t, b, *, vmem_budget_bytes=12 * 1024 * 1024):
    """(N, Cin, S) pooled activations -> (N, Cout, S) = W' @ x + b', tiled over (N, S)."""
    N, Cin, S = pooled_ncs.shape
    Cout = Cin_w = w_t.shape[0], w_t.shape[1]
    Cout, Cin_w = w_t.shape
    assert Cin_w == Cin
    in_bytes = pooled_ncs.dtype.itemsize

    ts = _pick_spatial_tile(S, Cin, Cout, in_bytes, vmem_budget_bytes)
    assert S % ts == 0
    grid = (N, S // ts)

    flops = 2 * N * S * Cin * Cout
    bytes_accessed = (N * Cin * S * in_bytes          # pooled activations
                      + Cout * Cin * w_t.dtype.itemsize
                      + Cout * 4                       # bias
                      + N * Cout * S * 4)              # f32 output

    return pl.pallas_call(
        _conv1x1_bias_kernel,
        out_shape=jax.ShapeDtypeStruct((N, Cout, S), jnp.float32),
        grid=grid,
        in_specs=[
            pl.BlockSpec((None, Cin, ts), lambda n, s: (n, 0, s)),
            pl.BlockSpec((Cout, Cin), lambda n, s: (0, 0)),
            pl.BlockSpec((Cout, 1), lambda n, s: (0, 0)),
        ],
        out_specs=pl.BlockSpec((None, Cout, ts), lambda n, s: (n, 0, s)),
        compiler_params=pltpu.CompilerParams(
            dimension_semantics=("parallel", "parallel"),
            vmem_limit_bytes=32 * 1024 * 1024,
        ),
        cost_estimate=pl.CostEstimate(
            flops=flops, transcendentals=0, bytes_accessed=bytes_accessed),
    )(pooled_ncs, w_t, b.reshape(Cout, 1).astype(jnp.float32))


# ----------------------------- forward pass --------------------------------

def transition_forward(params, x_ncdhw, *, eps=1e-5, compute_dtype=jnp.bfloat16):
    """Transition: BatchNorm3d -> Conv3d(1x1, bias=False) -> AvgPool3d(2, 2).

    BatchNorm uses PyTorch training-mode forward semantics (batch statistics,
    biased variance, eps=1e-5).
    """
    x = x_ncdhw.astype(jnp.float32)
    N, C, D, H, W = x.shape
    assert D % 2 == 0 and H % 2 == 0 and W % 2 == 0

    # ---- One fused XLA pass over x (no layout transpose of the big tensor) --
    # (a) per-channel sum / sum-of-squares for BN batch statistics,
    # (b) the 2x2x2 average pool (raw x -- the pool commutes with the
    #     pointwise BN+conv affine, so pooling first is exact and 8x cheaper).
    cnt = N * D * H * W
    s1 = jnp.sum(x, axis=(0, 2, 3, 4))
    s2 = jnp.sum(x * x, axis=(0, 2, 3, 4))
    mean = s1 / cnt
    var = jnp.maximum(s2 / cnt - mean * mean, 0.0)     # biased variance

    Dp, Hp, Wp = D // 2, H // 2, W // 2
    pooled = x.reshape(N, C, Dp, 2, Hp, 2, Wp, 2).mean(axis=(3, 5, 7))
    pooled_ncs = pooled.reshape(N, C, Dp * Hp * Wp).astype(compute_dtype)

    # ---- Fold the BN affine into the 1x1-conv weight (exact, f32 fold). ----
    scale = params["gamma"] / jnp.sqrt(var + eps)          # (Cin,)
    shift = params["beta"] - mean * scale                  # (Cin,)
    w_t = (params["w"] * scale[:, None]).T.astype(compute_dtype)   # (Cout, Cin)
    b = shift @ params["w"]                                         # (Cout,)

    y = conv1x1_bias_ncs(pooled_ncs, w_t, b)               # (N, Cout, S) f32
    return y.reshape(N, -1, Dp, Hp, Wp)                    # NCDHW


# ------------------------- reference (literal op order) --------------------

def transition_reference(params, x_ncdhw, eps=1e-5):
    """Plain-jnp f32 reference in the literal PyTorch order: BN -> conv -> pool."""
    x = x_ncdhw.astype(jnp.float32)
    mean = x.mean(axis=(0, 2, 3, 4), keepdims=True)
    var = ((x - mean) ** 2).mean(axis=(0, 2, 3, 4), keepdims=True)
    g = params["gamma"].reshape(1, -1, 1, 1, 1)
    be = params["beta"].reshape(1, -1, 1, 1, 1)
    y = (x - mean) / jnp.sqrt(var + eps) * g + be
    y = jnp.einsum("ncdhw,co->nodhw", y, params["w"],
                   precision=jax.lax.Precision.HIGHEST)
    N, Co, D, H, W = y.shape
    y = y.reshape(N, Co, D // 2, 2, H // 2, 2, W // 2, 2).mean(axis=(3, 5, 7))
    return y


# ----------------------------- parameter init ------------------------------

def make_transition_params(key, in_channels, out_channels):
    k1, k2, k3 = jax.random.split(key, 3)
    gamma = 1.0 + 0.1 * jax.random.normal(k1, (in_channels,), jnp.float32)
    beta = 0.1 * jax.random.normal(k2, (in_channels,), jnp.float32)
    # PyTorch Conv3d weight is (Cout, Cin, 1, 1, 1); stored here in the
    # equivalent (Cin, Cout) matmul layout.
    w = (2.0 / in_channels) ** 0.5 * jax.random.normal(
        k3, (in_channels, out_channels), jnp.float32)
    return {"gamma": gamma, "beta": beta, "w": w}


# ----------------------------------- main -----------------------------------

if __name__ == "__main__":
    key = jax.random.PRNGKey(0)
    k_x, k_p = jax.random.split(key)

    in_channels, out_channels = 16, 8                 # typical transition halving
    params = make_transition_params(k_p, in_channels, out_channels)

    # PyTorch-style NCDHW input: (batch=2, C=16, D=H=W=8)
    x = jax.random.normal(k_x, (2, in_channels, 8, 8, 8), jnp.float32)

    out = jax.jit(transition_forward)(params, x)
    jax.block_until_ready(out)
    assert out.shape == (2, out_channels, 4, 4, 4), out.shape

    # Sanity check against the literal-order f32 reference.  All fusions are
    # exact up to FP re-association; the MXU inputs are bf16 (f32 accumulate),
    # hence the slightly looser tolerance.
    ref = transition_reference(params, x)
    err = float(jnp.max(jnp.abs(out - ref)))
    assert err < 5e-2, f"mismatch vs reference: {err}"

    print("KERNEL_OK")
</pallas_src>

<mosaic_0001>
module attributes {stable_mosaic.version = 11 : i64} {
  func.func @_conv1x1_bias_kernel(%arg0: i32, %arg1: i32, %arg2: memref<1x16x64xbf16, #tpu.memory_space<vmem>>, %arg3: memref<8x16xbf16, #tpu.memory_space<vmem>>, %arg4: memref<8x1xf32, #tpu.memory_space<vmem>>, %arg5: memref<1x8x64xf32, #tpu.memory_space<vmem>>) attributes {dimension_semantics = [#tpu.dimension_semantics<parallel>, #tpu.dimension_semantics<parallel>], iteration_bounds = array<i64: 2, 1>, scalar_prefetch = 0 : i64, scratch_operands = 0 : i64, tpu.core_type = #tpu.core_type<tc>, window_params = [{transform_indices = @transform_0, window_bounds = array<i64: 1, 16, 64>}, {pipeline_mode = #tpu.pipeline_mode<synchronous>, transform_indices = @transform_1, window_bounds = array<i64: 8, 16>}, {pipeline_mode = #tpu.pipeline_mode<synchronous>, transform_indices = @transform_2, window_bounds = array<i64: 8, 1>}, {transform_indices = @transform_3, window_bounds = array<i64: 1, 8, 64>}]} {
    %c0 = arith.constant 0 : index
    %c0_0 = arith.constant 0 : index
    %0 = vector.load %arg3[%c0, %c0_0] : memref<8x16xbf16, #tpu.memory_space<vmem>>, vector<8x16xbf16>
    %c0_1 = arith.constant 0 : index
    %c0_2 = arith.constant 0 : index
    %c0_3 = arith.constant 0 : index
    %1 = vector.load %arg2[%c0_1, %c0_2, %c0_3] : memref<1x16x64xbf16, #tpu.memory_space<vmem>>, vector<1x16x64xbf16>
    %2 = vector.shape_cast %1 : vector<1x16x64xbf16> to vector<16x64xbf16>
    %cst = arith.constant dense<0.000000e+00> : vector<8x64xf32>
    %3 = tpu.matmul %0, %2, %cst {dimension_numbers = #tpu.dot_dimension_numbers<[1], [0], [0], [1], [0, 0, 1, 1], [], []>} : vector<8x16xbf16>, vector<16x64xbf16>, vector<8x64xf32> -> vector<8x64xf32>
    %c0_4 = arith.constant 0 : index
    %c0_5 = arith.constant 0 : index
    %4 = vector.load %arg4[%c0_4, %c0_5] : memref<8x1xf32, #tpu.memory_space<vmem>>, vector<8x1xf32>
    %5 = vector.broadcast %4 : vector<8x1xf32> to vector<8x64xf32>
    %6 = arith.addf %3, %5 : vector<8x64xf32>
    %c0_6 = arith.constant 0 : index
    %c0_7 = arith.constant 0 : index
    %c0_8 = arith.constant 0 : index
    %7 = vector.load %arg5[%c0_6, %c0_7, %c0_8] : memref<1x8x64xf32, #tpu.memory_space<vmem>>, vector<1x8x64xf32>
    %8 = vector.shape_cast %7 : vector<1x8x64xf32> to vector<8x64xf32>
    %9 = vector.shape_cast %6 : vector<8x64xf32> to vector<1x8x64xf32>
    tpu.vector_store %arg5[%c0_6, %c0_7, %c0_8], %9 {strides = array<i32>} : memref<1x8x64xf32, #tpu.memory_space<vmem>>, vector<1x8x64xf32>,
    return
  }
  func.func @transform_0(%arg0: i32, %arg1: i32) -> (i32, i32, i32) {
    %c0_i32 = arith.constant 0 : i32
    %c0_i32_0 = arith.constant 0 : i32
    return %arg0, %c0_i32, %arg1 : i32, i32, i32
  }
  func.func @transform_1(%arg0: i32, %arg1: i32) -> (i32, i32) {
    %c0_i32 = arith.constant 0 : i32
    %c0_i32_0 = arith.constant 0 : i32
    %c0_i32_1 = arith.constant 0 : i32
    return %c0_i32, %c0_i32_0 : i32, i32
  }
  func.func @transform_2(%arg0: i32, %arg1: i32) -> (i32, i32) {
    %c0_i32 = arith.constant 0 : i32
    %c0_i32_0 = arith.constant 0 : i32
    %c0_i32_1 = arith.constant 0 : i32
    return %c0_i32, %c0_i32_0 : i32, i32
  }
  func.func @transform_3(%arg0: i32, %arg1: i32) -> (i32, i32, i32) {
    %c0_i32 = arith.constant 0 : i32
    %c0_i32_0 = arith.constant 0 : i32
    return %arg0, %c0_i32, %arg1 : i32, i32, i32
  }
}

</mosaic_0001>

<bundles_post_ra>
// kernel: transition_forward.1
= control target key start
LH: loop header
LB: loop body
LE: loop exit
PB: predicated region body
PF: predicated region fallthrough
CT: control target
= control target key end

     0   :  { %s436_s12 = smov 0   ;;  %s438_s13 = smov 0   ;;  %s475_s0 = inlined_call_operand.vmem [shape: bf16[2,16,64], index: 0, kind: input, shape index: {}]   ;;  %s476_s1 = inlined_call_operand.vmem [shape: bf16[8,16], index: 1, kind: input, shape index: {}]   ;;  %s477_s2 = inlined_call_operand.vmem [shape: f32[8,1], index: 2, kind: input, shape index: {}]   ;;  %s478_s3 = inlined_call_operand.vmem [shape: f32[2,8,64], index: 3, kind: output, shape index: {}]  }
   0x1   :  { %s440_s14 = smov 0  }
   0x2 LB: > { %s25_s15 = sadd.s32 1, %s407_s13  ;;  %p343_p0 = scmp.ge.s32.totalorder %s411_s14, 1  ;;  %s411_s14 = sphi %s440_s14, %s13_s14   ;;  %s407_s13 = sphi %s438_s13, %s480_s13   ;;  %s403_s12 = sphi %s436_s12, %s479_s12  }
   0x3   : > { %p27_p1 = scmp.ge.s32.totalorder %s25_s15, 2  ;;  %p156_p2 = scmp.lt.s32.totalorder %s411_s14, 3 }
   0x5   : > { %s482_s15 = smov (%p27_p1, %s25_s15), 0  ;;  %p157_p3 = pnand %p343_p0, %p156_p2 }
   0x6   : > { %p185_p4 = scmp.lt.s32.totalorder (!%p157_p3), %s403_s12, 1  ;;  %v413_v0 = vmov (!%p157_p3), 0.0   ;;  %vm414_vm0 = vmmov (!%p157_p3), 0   ;;  %v204_v1 = vld [vmem:[%s477_s2] sm:$0xff] (!%p157_p3)  ;;  %v415_v2 = vmov (!%p157_p3), 0   ;;  %vm216_vm1 = vcmask (!%p157_p3), 130048  }
   0x7   : > { %160 = sbr.rel (%p157_p3) target bundleno = 236 (0xec), region = 32  ;;  %354 = vmatprep.subr.bf16.mxu0 (!%p157_p3), %v413_v0  ;;  %356 = vmatprep.mubr.msk.bf16.mxu0 (!%p157_p3), %vm414_vm0, %v413_v0  ;;  %v201_v4 = vld [vmem:[%s476_s1] sm:$0xf] (!%p157_p3)  ;;  %vm260_vm2 = vcmask (!%p157_p3), 523264  }
   0x8   : > { %387 = vset.pattern.permute.xlu0 (!%p157_p3), %v415_v2 }
   0x9   : > { %207 = vperm.xlu0 (!%p157_p3), %387, %v204_v1  }
   0xe   : > { %s484_s12 = smov (!%p185_p4, %s403_s12), 1 }
   0xf   : > { %s351_s18 = sshll.u32 %s484_s12, 3 }
  0x10   : > { %s192_s21 = scalar_lea.vmem %s475_s0, %s351_s18  ;;  %s199_s26 = scalar_lea.vmem %s478_s3, %s351_s18 }
  0x11   : > { %v388_v3 = vld [vmem:[%s192_s21] sm:$0xff]  }
  0x12   : > { %355 = vmatpush3.bf16.msra.mxu0 %v388_v3 }
  0x15   : > { %357 = vmatmul.mubr.msk.bf16.vlgmr.msra.gmra.mrb[0].mxu0 %vm216_vm1, %v201_v4 }
  0x88   : > { %v208_v5 = vpop.permute.xlu0 %207 }
  0xe8   : > { %v254_v6 = vpop.f32.mrb[0].mxu0 }
  0xe9   : > { %v255_v7 = vadd.f32 %v254_v6, %v208_v5  ;;  %v358_v8 = vpop.f32.mrb[1].mxu0 }
  0xea   : > { %v257_v9 = vpop.f32.mrb[2].mxu0 }
  0xeb   : > { %261 = vst.msk [vmem:[%s199_s26] sm:$0xff] %vm260_vm2, %v255_v7  ;;  %v359_v10 = vpop.f32.mrb[3].mxu0 }
  0xec PF: > { %s13_s14 = sadd.s32 1, %s411_s14   ;;  %s479_s12 = smov %s407_s13 }
  0xed   : > { %p10_p5 = scmp.ge.s32.totalorder %s13_s14, 4   ;;  %s480_s13 = smov %s482_s15 }
  0xef   :  { %12 = sbr.rel (!%p10_p5) target bundleno = 2 (0x2), region = 62 }

</bundles_post_ra>
